<compile_context>
chip_gen: v6e
topology: v6e:2x2x1
jax: 0.10.0
libtpu: 0.0.40
codegen_flags: <defaults>
</compile_context>

<pallas_src>
import functools

import jax
import jax.numpy as jnp
from jax.experimental import pallas as pl
from jax.experimental.pallas import tpu as pltpu


def _choose_seq_tile(T, D, itemsize, target_bytes=2 << 20):
    """Largest multiple-of-8 sequence tile dividing T with a block of ~target_bytes."""
    max_rows = max(8, target_bytes // max(1, D * itemsize))
    if T <= max_rows:
        return T
    best = None
    for tT in range(8, int(max_rows) + 1, 8):
        if T % tT == 0:
            best = tT
    if best is not None:
        return best
    # No aligned divisor of T: fall back to a ragged-edge grid (Pallas masks the tail).
    return int(max_rows) - int(max_rows) % 8


def _pe_add_kernel(seed_ref, pe_ref, x_ref, o_ref, *, dropout_p, training):
    # Blocks: pe_ref (1, tT, D), x_ref (1, tT, D), o_ref (1, tT, D).
    y = x_ref[0] + pe_ref[0]                       # (tT, D) VPU add, natural promotion

    if training and dropout_p > 0.0:
        # Inverted dropout with the stateful TPU PRNG, seeded uniquely per grid block.
        blk = pl.program_id(0) * pl.num_programs(1) + pl.program_id(1)
        pltpu.prng_seed(seed_ref[0] + blk)
        bits = pltpu.bitcast(pltpu.prng_random_bits(y.shape), jnp.uint32)
        thresh = jnp.uint32(min(2**32 - 1, int(round(dropout_p * (2**32)))))
        keep = bits >= thresh                      # P(keep) = 1 - p
        y = jnp.where(keep, y * (1.0 / (1.0 - dropout_p)), jnp.zeros_like(y))

    o_ref[0] = y.astype(o_ref.dtype)


def learnable_positional_encoding(x, pe, *, dropout_p=0.1, training=False, seed=0):
    """x: (B, T, D); pe: (1, max_len, D) with max_len == T (as the torch broadcast requires)."""
    B, T, D = x.shape
    assert pe.shape == (1, T, D), "forward requires seq_len == max_len (torch broadcast rule)"

    out_dtype = jnp.result_type(x.dtype, pe.dtype)
    tT = _choose_seq_tile(T, D, jnp.dtype(out_dtype).itemsize)
    grid = (B, pl.cdiv(T, tT))

    kernel = functools.partial(
        _pe_add_kernel, dropout_p=float(dropout_p), training=bool(training)
    )
    seed_arr = jnp.asarray([seed], dtype=jnp.int32)

    grid_spec = pltpu.PrefetchScalarGridSpec(
        num_scalar_prefetch=1,
        grid=grid,
        in_specs=[
            pl.BlockSpec((1, tT, D), lambda b, t, seed: (0, t, 0)),   # pe (shared over batch)
            pl.BlockSpec((1, tT, D), lambda b, t, seed: (b, t, 0)),   # x
        ],
        out_specs=pl.BlockSpec((1, tT, D), lambda b, t, seed: (b, t, 0)),
    )

    return pl.pallas_call(
        kernel,
        out_shape=jax.ShapeDtypeStruct((B, T, D), out_dtype),
        grid_spec=grid_spec,
        compiler_params=pltpu.CompilerParams(
            dimension_semantics=("parallel", "parallel"),
            vmem_limit_bytes=32 * 1024 * 1024,
        ),
    )(seed_arr, pe, x)


def learnable_positional_encoding_ref(x, pe):
    """Pure-JAX reference of the eval-mode forward (dropout is identity in eval)."""
    return x + pe


if __name__ == "__main__":
    # Small demo shapes consistent with the module: [batch, seq, embed_dim].
    # D=128 keeps the lane axis dense; max_len == seq_len as the torch forward implies.
    B, max_len, d_model = 2, 64, 128

    key = jax.random.PRNGKey(0)
    kx, kpe = jax.random.split(key)
    x = jax.random.normal(kx, (B, max_len, d_model), dtype=jnp.float32)
    pe = jax.random.uniform(
        kpe, (1, max_len, d_model), minval=-0.02, maxval=0.02, dtype=jnp.float32
    )

    # Eval-mode forward (dropout = identity), like module.eval() in torch.
    out = learnable_positional_encoding(x, pe, dropout_p=0.1, training=False)
    out = jax.block_until_ready(out)

    ref = learnable_positional_encoding_ref(x, pe)
    assert out.shape == x.shape
    assert out.dtype == x.dtype
    assert jnp.allclose(out, ref, atol=1e-6, rtol=1e-6), "mismatch vs reference"

    print("KERNEL_OK")
</pallas_src>

<mosaic_0001>
module attributes {stable_mosaic.version = 11 : i64} {
  func.func @_pe_add_kernel(%arg0: i32, %arg1: i32, %arg2: memref<1xi32, #tpu.memory_space<smem>>, %arg3: memref<1x64x128xf32, #tpu.memory_space<vmem>>, %arg4: memref<1x64x128xf32, #tpu.memory_space<vmem>>, %arg5: memref<1x64x128xf32, #tpu.memory_space<vmem>>) attributes {dimension_semantics = [#tpu.dimension_semantics<parallel>, #tpu.dimension_semantics<parallel>], iteration_bounds = array<i64: 2, 1>, scalar_prefetch = 1 : i64, scratch_operands = 0 : i64, tpu.core_type = #tpu.core_type<tc>, window_params = [{transform_indices = @transform_0, window_bounds = array<i64: 1, 64, 128>}, {transform_indices = @transform_1, window_bounds = array<i64: 1, 64, 128>}, {transform_indices = @transform_2, window_bounds = array<i64: 1, 64, 128>}]} {
    %c0 = arith.constant 0 : index
    %c0_0 = arith.constant 0 : index
    %c0_1 = arith.constant 0 : index
    %0 = vector.load %arg4[%c0, %c0_0, %c0_1] : memref<1x64x128xf32, #tpu.memory_space<vmem>>, vector<1x64x128xf32>
    %1 = vector.shape_cast %0 : vector<1x64x128xf32> to vector<64x128xf32>
    %c0_2 = arith.constant 0 : index
    %c0_3 = arith.constant 0 : index
    %c0_4 = arith.constant 0 : index
    %2 = vector.load %arg3[%c0_2, %c0_3, %c0_4] : memref<1x64x128xf32, #tpu.memory_space<vmem>>, vector<1x64x128xf32>
    %3 = vector.shape_cast %2 : vector<1x64x128xf32> to vector<64x128xf32>
    %4 = arith.addf %1, %3 : vector<64x128xf32>
    %c0_5 = arith.constant 0 : index
    %c0_6 = arith.constant 0 : index
    %c0_7 = arith.constant 0 : index
    %5 = vector.load %arg5[%c0_5, %c0_6, %c0_7] : memref<1x64x128xf32, #tpu.memory_space<vmem>>, vector<1x64x128xf32>
    %6 = vector.shape_cast %5 : vector<1x64x128xf32> to vector<64x128xf32>
    %7 = vector.shape_cast %4 : vector<64x128xf32> to vector<1x64x128xf32>
    tpu.vector_store %arg5[%c0_5, %c0_6, %c0_7], %7 {strides = array<i32>} : memref<1x64x128xf32, #tpu.memory_space<vmem>>, vector<1x64x128xf32>,
    return
  }
  func.func @transform_0(%arg0: i32, %arg1: i32, %arg2: memref<1xi32, #tpu.memory_space<smem>>) -> (i32, i32, i32) {
    %c0_i32 = arith.constant 0 : i32
    %c0_i32_0 = arith.constant 0 : i32
    %c0_i32_1 = arith.constant 0 : i32
    return %c0_i32, %arg1, %c0_i32_0 : i32, i32, i32
  }
  func.func @transform_1(%arg0: i32, %arg1: i32, %arg2: memref<1xi32, #tpu.memory_space<smem>>) -> (i32, i32, i32) {
    %c0_i32 = arith.constant 0 : i32
    %c0_i32_0 = arith.constant 0 : i32
    return %arg0, %arg1, %c0_i32 : i32, i32, i32
  }
  func.func @transform_2(%arg0: i32, %arg1: i32, %arg2: memref<1xi32, #tpu.memory_space<smem>>) -> (i32, i32, i32) {
    %c0_i32 = arith.constant 0 : i32
    %c0_i32_0 = arith.constant 0 : i32
    return %arg0, %arg1, %c0_i32 : i32, i32, i32
  }
}

</mosaic_0001>

<bundles_post_ra>
// kernel: tpu_custom_call.1
= control target key start
LH: loop header
LB: loop body
LE: loop exit
PB: predicated region body
PF: predicated region fallthrough
CT: control target
= control target key end

     0   :  { %9 = vsyncpa [#allocation5], 0  ;;  %s807_s0 = inlined_call_operand.<no memory space> [shape: s32[1], index: 0, kind: input, shape index: {}]   ;;  %s808_s1 = inlined_call_operand.hbm [shape: f32[1,64,128], index: 1, kind: input, shape index: {}]   ;;  %s809_s2 = inlined_call_operand.hbm [shape: f32[2,64,128], index: 2, kind: input, shape index: {}]   ;;  %s810_s3 = inlined_call_operand.hbm [shape: f32[2,64,128], index: 3, kind: output, shape index: {}]  }
   0x1   :  { %10 = vsyncpa [#allocation8], 0 }
   0x2   :  { %12 = vsyncpa [#allocation8 + $0x1], 0 }
   0x3   :  { %13 = vsyncpa [#allocation6], 0 }
   0x4   :  { %15 = vsyncpa [#allocation6 + $0x1], 0  ;;  %s620_s12 = smov 0   ;;  %s622_s13 = smov 0  }
   0x5   :  { %s624_s14 = smov 0   ;;  %s626_s0 = smov 0  }
   0x6   :  { %s628_s15 = smov 0   ;;  %s630_s16 = smov 0  }
   0x7 LB: > { %s357_s17 = sadd.s32 4294967295, %s591_s16   ;;  %s358_s18 = sadd.s32 4294967294, %s591_s16   ;;  %s591_s16 = sphi %s630_s16, %s21_s16   ;;  %s587_s15 = sphi %s628_s15, %s830_s15   ;;  %s583_s0 = sphi %s626_s0, %s829_s0   ;;  %s579_s14 = sphi %s624_s14, %s828_s14   ;;  %s575_s13 = sphi %s622_s13, %s827_s13   ;;  %s571_s12 = sphi %s620_s12, %s826_s12  }
   0x8   : > { %p81_p0 = scmp.ne.s32.totalorder %s575_s13, %s571_s12  ;;  %p654_p1 = scmp.eq.s32.totalorder %s357_s17, 0 }
   0x9   : > { %p658_p2 = scmp.eq.s32.totalorder %s357_s17, 1  ;;  %p113_p3 = scmp.eq.s32.totalorder %s358_s18, 1 }
   0xa   : > { %p664_p4 = por %p654_p1, %p81_p0  ;;  %p359_p5 = scmp.ge.s32.totalorder %s591_s16, 1 }
   0xb   : > { %p669_p6 = por %p113_p3, %p81_p0  ;;  %p120_p7 = scmp.lt.s32.totalorder %s591_s16, 3 }
   0xc   : > { %s815_s21 = scalar_select %p664_p4, 1, 0 }
   0xd   : > { %s816_s22 = scalar_select %p669_p6, 1, 0 }
   0xe   : > { %p674_p8 = pnand %p359_p5, %p120_p7  ;;  %s593_s24 = smov [#allocation4]  }
   0xf   : > { %s135_s25 = sshll.u32 %s593_s24, 4  ;;  %s33_s27 = sadd.s32 1, %s587_s15  ;;  %s136_s25 = int_to_ptr.vmem [resolvable:$true] %s135_s25 }
  0x10   : > { %p384_p9 = pneg %p674_p8  ;;  %s464_s28 = scalar_lea.vmem %s136_s25, 1024 }
  0x11   : > { %p465_p13 = scmp.ne.s32.totalorder %s136_s25, %s464_s28  ;;  %p472_p5 = scmp.lt.s32.totalorder %s136_s25, %s136_s25 }
  0x12   : > { %p683_p11 = pnand %p384_p9, %p654_p1  ;;  %p473_p7 = scmp.lt.s32.totalorder %s464_s28, %s464_s28 }
  0x14   : > { %p455_p12 = pneg %p683_p11  ;;  %p474_p6 = por %p473_p7, %p472_p5 }
  0x16   : > { %p467_p0 = pnand %p465_p13, %p455_p12 }
  0x18   : > { %p468_p3 = pneg %p467_p0 }
  0x1a   : > { %p475_p4 = pnand %p474_p6, %p468_p3 }
  0x1c   : > { %478 = shalt.err (!%p475_p4)
}
  0x1d   : > { %s812_s29 = smov 128   ;;  %s595_s30 = smov 8  }
  0x1e   : > { %387 = dma.hbm_to_vmem [thread:$0]  (!%p683_p11), %s808_s1, 1024, %s136_s25, [#allocation5], %s812_s29, %s812_s29, %s595_s30  }
  0x1f   : > { %p35_p4 = scmp.ge.s32.totalorder %s33_s27, 2  ;;  %s68_s6 = sadd.s32 1, %s579_s14 }
  0x20   : > { %p75_p6 = scmp.ne.s32.totalorder %s579_s14, %s575_s13  ;;  %p76_p9 = scmp.eq.s32.totalorder %s591_s16, 0 }
  0x21   : > { %s832_s27 = smov (%p35_p4, %s33_s27), 0  ;;  %p397_p0 = scmp.lt.s32.totalorder %s591_s16, 2 }
  0x22   : > { %p704_p12 = por %p76_p9, %p75_p6  ;;  %p710_p13 = por %p658_p2, %p75_p6 }
  0x23   : > { %s63_s9 = ssub.s32 %s587_s15, %s832_s27  ;;  %s149_s10 = sand.u32 1, %s579_s14  }
  0x24   : > { %p66_p11 = scmp.eq.s32.totalorder %s63_s9, 0  ;;  %s362_s11 = sshll.u32 %s149_s10, 6 }
  0x25   : > { %s374_s18 = sshll.u32 %s587_s15, 10  ;;  %s153_s28 = scalar_lea.vmem [#allocation7], %s362_s11 }
  0x26   : > { %s719_s17 = scalar_select %p66_p11, %s579_s14, %s68_s6  }
  0x27   : > { %s161_s26 = scalar_lea.hbm %s809_s2, %s374_s18  ;;  %s162_s4 = sshll.u32 %s153_s28, 4  ;;  %s163_s4 = int_to_ptr.vmem [resolvable:$true] %s162_s4 }
  0x28   : > { %p727_p2 = pnand %p397_p0, %p704_p12  ;;  %s150_s5 = scalar_lea.sflag [#allocation8], %s149_s10 }
  0x29   : > { %s492_s9 = scalar_lea.vmem %s163_s4, 1024  ;;  %s596_s6 = smov [#allocation7]  }
  0x2a   : > { %p481_p3 = pneg %p727_p2  ;;  %p493_p5 = scmp.ne.s32.totalorder %s163_s4, %s492_s9 }
  0x2b   : > { %s497_s29 = sshll.u32 %s596_s6, 4  ;;  %s498_s29 = int_to_ptr.vmem [resolvable:$false] %s497_s29 }
  0x2c   : > { %p495_p7 = pnand %p493_p5, %p481_p3  ;;  %s499_s18 = scalar_lea.vmem %s498_s29, 2048 }
  0x2d   : > { %p500_p6 = scmp.lt.s32.totalorder %s163_s4, %s498_s29  ;;  %p501_p9 = scmp.lt.s32.totalorder %s499_s18, %s492_s9 }
  0x2e   : > { %p496_p4 = pneg %p495_p7 }
  0x2f   : > { %p502_p11 = por %p501_p9, %p500_p6 }
  0x31   : > { %p503_p10 = pnand %p502_p11, %p496_p4 }
  0x33   : > { %506 = shalt.err (!%p503_p10)
}
  0x34   : > { %s822_s7 = smov 128   ;;  %174 = sbr.rel (%p674_p8) target bundleno = 87 (0x57), region = 28 }
  0x35   : > { %391 = dma.hbm_to_vmem [thread:$0]  (!%p727_p2), %s161_s26, 1024, %s163_s4, %s150_s5, %s822_s7, %s822_s7, %s595_s30  }
  0x39   : > { %558 = dma.done.wait (%p654_p1), [#allocation5], 1024  }
  0x3a   : > { %560 = vsyncadd (%p654_p1), [#allocation5], 4294966272  ;;  %s745_s29 = sand.u32 1, %s575_s13   ;;  %p823_p10 = scmp.ne.s32.totalorder %s815_s21, 0 }
  0x3b   : > { %s367_s10 = sshll.u32 %s745_s29, 6  ;;  %s181_s11 = scalar_lea.sflag [#allocation8], %s745_s29 }
  0x3c   : > { %s184_s24 = scalar_lea.vmem [#allocation7], %s367_s10 }
  0x3d   : > { %562 = dma.done.wait (%p823_p10), %s181_s11, 1024  }
  0x3e   : > { %564 = vsyncadd (%p823_p10), %s181_s11, 4294966272  ;;  %v208_v0 = vld [vmem:[%s184_s24] sm:$0xff]  ;;  %v209_v2 = vld [vmem:[%s184_s24 + $0x8] sm:$0xff]  ;;  %s204_s19 = scalar_lea.vmem [#allocation9], %s367_s10  ;;  %s375_s30 = sshll.u32 %s583_s0, 10 }
  0x3f   : > { %v216_v1 = vld [vmem:[#allocation4] sm:$0xff]  ;;  %v217_v4 = vld [vmem:[#allocation4 + $0x8] sm:$0xff]  ;;  %v210_v5 = vld [vmem:[%s184_s24 + $0x10] sm:$0xff]  ;;  %s256_s23 = sshll.u32 %s204_s19, 4  ;;  %s759_s25 = scalar_lea.hbm %s810_s3, %s375_s30  ;;  %s754_s23 = int_to_ptr.vmem [resolvable:$true] %s256_s23 }
  0x40   : > { %v224_v3 = vadd.f32 %v216_v1, %v208_v0  ;;  %v218_v6 = vld [vmem:[#allocation4 + $0x10] sm:$0xff]  ;;  %v225_v7 = vadd.f32 %v217_v4, %v209_v2  ;;  %v211_v9 = vld [vmem:[%s184_s24 + $0x18] sm:$0xff]  ;;  %v212_v11 = vld [vmem:[%s184_s24 + $0x20] sm:$0xff]  ;;  %s241_s26 = scalar_lea.sflag [#allocation6], %s745_s29  ;;  %s507_s28 = scalar_lea.vmem %s754_s23, 1024 }
  0x41   : > { %v226_v8 = vadd.f32 %v218_v6, %v210_v5  ;;  %v219_v10 = vld [vmem:[#allocation4 + $0x18] sm:$0xff]  ;;  %v220_v13 = vld [vmem:[#allocation4 + $0x20] sm:$0xff]  ;;  %v213_v14 = vld [vmem:[%s184_s24 + $0x28] sm:$0xff]  ;;  %p508_p1 = scmp.ne.s32.totalorder %s754_s23, %s507_s28  ;;  %s597_s4 = smov [#allocation9]  }
  0x42   : > { %232 = vst [vmem:[%s204_s19] sm:$0xff] %v224_v3  ;;  %v227_v12 = vadd.f32 %v219_v10, %v211_v9  ;;  %v221_v15 = vld [vmem:[#allocation4 + $0x28] sm:$0xff]  ;;  %233 = vst [vmem:[%s204_s19 + $0x8] sm:$0xff] %v225_v7  ;;  %v228_v16 = vadd.f32 %v220_v13, %v212_v11  ;;  %v214_v18 = vld [vmem:[%s184_s24 + $0x30] sm:$0xff]  ;;  %s511_s20 = sshll.u32 %s597_s4, 4  ;;  %s512_s20 = int_to_ptr.vmem [resolvable:$false] %s511_s20 }
  0x43   : > { %234 = vst [vmem:[%s204_s19 + $0x10] sm:$0xff] %v226_v8  ;;  %v229_v17 = vadd.f32 %v221_v15, %v213_v14  ;;  %v222_v19 = vld [vmem:[#allocation4 + $0x30] sm:$0xff]  ;;  %v215_v20 = vld [vmem:[%s184_s24 + $0x38] sm:$0xff]  ;;  %p509_p8 = pnand %p508_p1, %p710_p13  ;;  %s513_s5 = scalar_lea.vmem %s512_s20, 2048 }
  0x44   : > { %235 = vst [vmem:[%s204_s19 + $0x18] sm:$0xff] %v227_v12  ;;  %v230_v21 = vadd.f32 %v222_v19, %v214_v18  ;;  %v223_v22 = vld [vmem:[#allocation4 + $0x38] sm:$0xff]  ;;  %236 = vst [vmem:[%s204_s19 + $0x20] sm:$0xff] %v228_v16  ;;  %p514_p0 = scmp.lt.s32.totalorder %s754_s23, %s512_s20  ;;  %p515_p2 = scmp.lt.s32.totalorder %s513_s5, %s507_s28 }
  0x45   : > { %237 = vst [vmem:[%s204_s19 + $0x28] sm:$0xff] %v229_v17  ;;  %v231_v23 = vadd.f32 %v223_v22, %v215_v20  ;;  %p510_p12 = pneg %p509_p8 }
  0x46   : > { %238 = vst [vmem:[%s204_s19 + $0x30] sm:$0xff] %v230_v21  ;;  %p516_p3 = por %p515_p2, %p514_p0 }
  0x47   : > { %239 = vst [vmem:[%s204_s19 + $0x38] sm:$0xff] %v231_v23 }
  0x48   : > { %p517_p5 = pnand %p516_p3, %p510_p12 }
  0x4a   : > { %520 = shalt.err (!%p517_p5)
}
  0x4b   : > { %s521_s9 = scalar_lea.hbm %s759_s25, 1024  ;;  %s525_s7 = scalar_lea.hbm %s810_s3, 2048 }
  0x4c   : > { %p522_p7 = scmp.ne.s32.totalorder %s759_s25, %s521_s9  ;;  %p526_p9 = scmp.lt.s32.totalorder %s759_s25, %s810_s3 }
  0x4d   : > { %p527_p11 = scmp.lt.s32.totalorder %s525_s7, %s521_s9 }
  0x4e   : > { %p523_p4 = pnand %p522_p7, %p710_p13 }
  0x4f   : > { %p528_p10 = por %p527_p11, %p526_p9 }
  0x50   : > { %p524_p6 = pneg %p523_p4 }
  0x52   : > { %p529_p1 = pnand %p528_p10, %p524_p6 }
  0x54   : > { %532 = shalt.err (!%p529_p1)
}
  0x55   : > { %s598_s24 = smov 128   ;;  %s599_s19 = smov 8  }
  0x56   : > { %382 = dma.vmem_to_hbm [thread:$0]  (%p710_p13), %s754_s23, 1024, %s759_s25, %s241_s26, %s598_s24, %s598_s24, %s599_s19  }
  0x57 PF: > { %s271_s30 = sand.u32 1, %s571_s12   ;;  %p824_p8 = scmp.ne.s32.totalorder %s816_s22, 0 }
  0x58   : > { %p825_p12 = scmp.ge.s32.totalorder %s591_s16, 2  ;;  %s272_s0 = scalar_lea.sflag [#allocation6], %s271_s30 }
  0x5a   : > { %p393_p0 = pnand %p825_p12, %p824_p8 }
  0x5c   : > { %p394_p2 = pneg %p393_p0 }
  0x5e   : > { %566 = dma.done.wait (%p394_p2), %s272_s0, 1024  }
  0x5f   : > { %568 = vsyncadd (%p394_p2), %s272_s0, 4294966272  ;;  %s21_s16 = sadd.s32 1, %s591_s16   ;;  %s826_s12 = smov %s575_s13 }
  0x60   : > { %p18_p3 = scmp.ge.s32.totalorder %s21_s16, 4   ;;  %s827_s13 = smov %s579_s14 }
  0x61   : > { %s828_s14 = smov %s719_s17  ;;  %s829_s0 = smov %s587_s15 }
  0x62   : > { %s830_s15 = smov %s832_s27  ;;  %20 = sbr.rel (!%p18_p3) target bundleno = 7 (0x7), region = 79 }
  0x67   :  { %277 = vsyncpa [#allocation5], 1 }
  0x68   :  { %279 = vsyncpa [#allocation5 + $0x1], 1 }
  0x69   :  { %280 = vsyncpa [#allocation8], 1 }
  0x6a   :  { %282 = vsyncpa [#allocation8 + $0x1], 1 }
  0x6b   :  { %283 = vsyncpa [#allocation6], 1 }
  0x6c   :  { %285 = vsyncpa [#allocation6 + $0x1], 1 }

</bundles_post_ra>
